<compile_context>
chip_gen: v7x
topology: tpu7x:2x2x1
jax: 0.10.0
libtpu: 0.0.40
codegen_flags: <defaults>
</compile_context>

<pallas_src>
import functools

import jax
import jax.numpy as jnp
import numpy as np
from jax.experimental import pallas as pl
from jax.experimental.pallas import tpu as pltpu


# --------------------------------- budgets / tiling ---------------------------------

def _vmem_budgets():
    """(vmem_limit_bytes, input-tile budget) sized from the actual chip generation."""
    try:
        cap = int(pltpu.get_tpu_info().vmem_capacity_bytes)
    except Exception:
        cap = 64 * 1024 * 1024  # conservative (v7x per-core VMEM)
    vmem_limit = max(32 * 1024 * 1024, min(int(cap * 3 / 4), 100 * 1024 * 1024))
    return vmem_limit, vmem_limit // 2


def _choose_row_tile(n_rows, d, itemsize, budget):
    """Largest row tile whose double-buffered input tiles fit the VMEM budget."""
    per_row = 4 * d * int(itemsize)            # 2 operands x 2 pipeline buffers, input dtype
    tm = budget // max(per_row, 1)
    tm = int(max(min(tm, 2048), 8))
    if tm >= 128:
        tm = (tm // 128) * 128                 # lane-dense 1-D output blocks
    else:
        tm = (tm // 8) * 8                     # huge-D fallback -> 2-D (tm, 1) output blocks
    if tm >= n_rows:
        return n_rows                          # single block == full array (no (8,128) constraint)
    return tm


def _choose_k_tile(d):
    """Contraction tile for the MXU path. Only K-tile when tk divides d exactly so a ragged
    K block can never feed unspecified data into the accumulator."""
    if d <= 1024 or d % 128 != 0:
        # TODO(synk): very large non-128-divisible D keeps tk == d (no safe ragged K block).
        return d
    for cand in (1024, 512, 256, 128):
        if d % cand == 0:
            return cand
    return d


def _choose_mn_tile(n, tk, itemsize, budget):
    """M/N tile for the MXU path (2 operand double-buffers + f32 acc + double-buffered out)."""
    t = 512
    while t > 128 and (4 * t * tk * int(itemsize) + 4 * t * t * 4) > budget:
        t //= 2
    if t >= n:
        return n
    return t


# --------------------- row-wise cosine kernel (elementwise broadcast) ---------------------

def _cosine_rows_kernel(x_ref, y_ref, o_ref, *, eps, inv_temp):
    # x_ref: (TM, D); y_ref: (TM, D) or (1, D) (broadcast operand); o_ref: (TM,) or (TM, 1).
    x = x_ref[...].astype(jnp.float32)
    y = y_ref[...].astype(jnp.float32)
    inv_eps = 1.0 / eps
    # dot * min(rsqrt, 1/eps) * min(rsqrt, 1/eps) == torch's per-operand clamp-norm-then-normalize.
    rx = jnp.minimum(jax.lax.rsqrt(jnp.sum(x * x, axis=-1)), inv_eps)
    ry = jnp.minimum(jax.lax.rsqrt(jnp.sum(y * y, axis=-1)), inv_eps)
    dxy = jnp.sum(x * y, axis=-1)
    vals = dxy * rx * ry * inv_temp
    if o_ref.ndim == 1:
        o_ref[...] = vals.astype(o_ref.dtype)
    else:
        o_ref[...] = vals[:, None].astype(o_ref.dtype)


def _cosine_rows(x2, y2, temp, eps, out_dtype, vmem_limit, tile_budget):
    """cos(x2[i], y2[i or 0]) / temp for (N, D) x and (N, D) or (1, D) y."""
    n, d = x2.shape
    y_rows = y2.shape[0]
    itemsize = max(x2.dtype.itemsize, y2.dtype.itemsize)
    tm = _choose_row_tile(n, d, itemsize, tile_budget)
    grid = (pl.cdiv(n, tm),)

    x_spec = pl.BlockSpec((tm, d), lambda i: (i, 0))
    if y_rows == n:
        y_spec = pl.BlockSpec((tm, d), lambda i: (i, 0))
    else:  # y_rows == 1: small operand is simply re-read per tile (no HBM broadcast copy)
        y_spec = pl.BlockSpec((1, d), lambda i: (0, 0))

    lane_dense = (tm >= 128) or (tm == n)
    if lane_dense:
        out_shape = jax.ShapeDtypeStruct((n,), out_dtype)
        out_spec = pl.BlockSpec((tm,), lambda i: (i,))
    else:
        # TODO(synk): for extremely large D, chunk D inside the kernel instead of shrinking
        # the row tile below 128; the (tm, 1) output keeps it correct meanwhile.
        out_shape = jax.ShapeDtypeStruct((n, 1), out_dtype)
        out_spec = pl.BlockSpec((tm, 1), lambda i: (i, 0))

    kernel = functools.partial(
        _cosine_rows_kernel, eps=float(eps), inv_temp=float(1.0 / temp)
    )
    out = pl.pallas_call(
        kernel,
        out_shape=out_shape,
        grid_spec=pltpu.PrefetchScalarGridSpec(
            num_scalar_prefetch=0,
            grid=grid,
            in_specs=[x_spec, y_spec],
            out_specs=out_spec,
        ),
        compiler_params=pltpu.CompilerParams(
            dimension_semantics=("parallel",),
            vmem_limit_bytes=vmem_limit,
        ),
    )(x2, y2)
    return out if lane_dense else out.reshape(n)


# --------------------- MXU path for the SimCSE-style outer product ---------------------

def _inv_norm_kernel(x_ref, o_ref, *, eps):
    x = x_ref[...].astype(jnp.float32)
    s = jnp.sum(x * x, axis=-1, keepdims=True)
    o_ref[...] = jnp.minimum(jax.lax.rsqrt(s), 1.0 / eps)


def _inv_norms(x2, eps, vmem_limit, tile_budget):
    """Clamped per-row inverse norms: (N, 1) f32 = min(rsqrt(sum x^2), 1/eps)."""
    n, d = x2.shape
    tm = _choose_row_tile(n, d, x2.dtype.itemsize, tile_budget)
    kernel = functools.partial(_inv_norm_kernel, eps=float(eps))
    return pl.pallas_call(
        kernel,
        out_shape=jax.ShapeDtypeStruct((n, 1), jnp.float32),
        grid_spec=pltpu.PrefetchScalarGridSpec(
            num_scalar_prefetch=0,
            grid=(pl.cdiv(n, tm),),
            in_specs=[pl.BlockSpec((tm, d), lambda i: (i, 0))],
            out_specs=pl.BlockSpec((tm, 1), lambda i: (i, 0)),
        ),
        compiler_params=pltpu.CompilerParams(
            dimension_semantics=("parallel",),
            vmem_limit_bytes=vmem_limit,
        ),
    )(x2)


def _scaled_matmul_nt_single_kernel(a_ref, b_ref, rx_ref, ry_ref, o_ref, *, inv_temp):
    # K grid == 1: no scratch, no pl.when. out = (a @ b^T) * rx * ry * inv_temp.
    acc = jax.lax.dot_general(
        a_ref[...], b_ref[...],
        dimension_numbers=(((1,), (1,)), ((), ())),
        preferred_element_type=jnp.float32,
    )
    o_ref[...] = (acc * rx_ref[...] * ry_ref[...] * inv_temp).astype(o_ref.dtype)


def _scaled_matmul_nt_acc_kernel(a_ref, b_ref, rx_ref, ry_ref, o_ref, acc_ref, *, inv_temp):
    # K-tiled: f32 accumulator scratch, scale applied once at the last K step.
    @pl.when(pl.program_id(2) == 0)
    def _():
        acc_ref[...] = jnp.zeros_like(acc_ref)

    acc_ref[...] += jax.lax.dot_general(
        a_ref[...], b_ref[...],
        dimension_numbers=(((1,), (1,)), ((), ())),
        preferred_element_type=jnp.float32,
    )

    @pl.when(pl.program_id(2) == pl.num_programs(2) - 1)
    def _():
        o_ref[...] = (acc_ref[...] * rx_ref[...] * ry_ref[...] * inv_temp).astype(o_ref.dtype)


def _cosine_outer(xr, yr, temp, eps, out_dtype, vmem_limit, tile_budget):
    """out[a, b] = cos(xr[a], yr[b]) / temp: raw-dtype MXU matmul + per-row inverse norms."""
    a_n, d = xr.shape
    b_n, _ = yr.shape

    rx = _inv_norms(xr, eps, vmem_limit, tile_budget)            # (A, 1) f32
    ry = _inv_norms(yr, eps, vmem_limit, tile_budget)            # (B, 1) f32
    ry_t = ry.reshape(1, b_n)                                    # (1, B) f32 (tiny)

    itemsize = max(xr.dtype.itemsize, yr.dtype.itemsize)
    tk = _choose_k_tile(d)
    tma = _choose_mn_tile(a_n, tk, itemsize, tile_budget)
    tnb = _choose_mn_tile(b_n, tk, itemsize, tile_budget)
    nk = pl.cdiv(d, tk)
    grid = (pl.cdiv(a_n, tma), pl.cdiv(b_n, tnb), nk)
    inv_temp = float(1.0 / temp)

    in_specs = [
        pl.BlockSpec((tma, tk), lambda i, j, k: (i, k)),
        pl.BlockSpec((tnb, tk), lambda i, j, k: (j, k)),
        pl.BlockSpec((tma, 1), lambda i, j, k: (i, 0)),
        pl.BlockSpec((1, tnb), lambda i, j, k: (0, j)),
    ]
    out_spec = pl.BlockSpec((tma, tnb), lambda i, j, k: (i, j))

    if nk == 1:
        kernel = functools.partial(_scaled_matmul_nt_single_kernel, inv_temp=inv_temp)
        scratch = []
    else:
        kernel = functools.partial(_scaled_matmul_nt_acc_kernel, inv_temp=inv_temp)
        scratch = [pltpu.VMEM((tma, tnb), jnp.float32)]

    return pl.pallas_call(
        kernel,
        out_shape=jax.ShapeDtypeStruct((a_n, b_n), out_dtype),
        grid_spec=pltpu.PrefetchScalarGridSpec(
            num_scalar_prefetch=0,
            grid=grid,
            in_specs=in_specs,
            out_specs=out_spec,
            scratch_shapes=scratch,
        ),
        compiler_params=pltpu.CompilerParams(
            dimension_semantics=("parallel", "parallel", "arbitrary"),
            vmem_limit_bytes=vmem_limit,
        ),
    )(xr, yr, rx, ry_t)


# ------------------------------------ wrapper ------------------------------------

def _outer_split(x_shape, y_shape):
    """If the broadcast is an outer product out[a, b] = cos(x_row[a], y_row[b]) with x varying
    only over earlier lead axes and y only over later ones, return (x_rows, y_rows); else None."""
    full = jnp.broadcast_shapes(x_shape, y_shape)
    if len(full) < 2:
        return None
    d = full[-1]
    nlead = len(full) - 1
    xs = (1,) * (len(full) - len(x_shape)) + tuple(x_shape)
    ys = (1,) * (len(full) - len(y_shape)) + tuple(y_shape)
    if xs[-1] != d or ys[-1] != d:
        return None  # feature-dim broadcast; not handled here
    x_axes = [i for i in range(nlead) if xs[i] != 1]
    y_axes = [i for i in range(nlead) if ys[i] != 1]
    if not x_axes or not y_axes:
        return None
    if set(x_axes) & set(y_axes):
        return None  # shared varying axis -> elementwise, not an outer product
    if max(x_axes) > min(y_axes):
        return None  # interleaved axes would need an output transpose
    x_rows = int(np.prod([xs[i] for i in x_axes]))
    y_rows = int(np.prod([ys[i] for i in y_axes]))
    return x_rows, y_rows


def similarity(x, y, temp, *, eps=1e-8):
    """Equivalent of Similarity(temp).forward(x, y): cosine_similarity(x, y, dim=-1) / temp."""
    x = jnp.asarray(x)
    y = jnp.asarray(y)
    out_dtype = jnp.promote_types(x.dtype, y.dtype)
    full = jnp.broadcast_shapes(x.shape, y.shape)
    d = full[-1]
    lead = full[:-1]
    n = int(np.prod(lead)) if lead else 1
    vmem_limit, tile_budget = _vmem_budgets()

    xs = (1,) * (len(full) - x.ndim) + tuple(x.shape)
    ys = (1,) * (len(full) - y.ndim) + tuple(y.shape)
    x_full = xs[:-1] == lead and xs[-1] == d
    y_full = ys[:-1] == lead and ys[-1] == d
    x_one = all(s == 1 for s in xs[:-1]) and xs[-1] == d
    y_one = all(s == 1 for s in ys[:-1]) and ys[-1] == d

    # Element-wise row paths (no broadcast materialization).
    if x_full and y_full:
        out = _cosine_rows(x.reshape(n, d), y.reshape(n, d), temp, eps, out_dtype,
                           vmem_limit, tile_budget)
        return out.reshape(lead)
    if x_full and y_one:
        out = _cosine_rows(x.reshape(n, d), y.reshape(1, d), temp, eps, out_dtype,
                           vmem_limit, tile_budget)
        return out.reshape(lead)
    if y_full and x_one:
        out = _cosine_rows(y.reshape(n, d), x.reshape(1, d), temp, eps, out_dtype,
                           vmem_limit, tile_budget)
        return out.reshape(lead)

    # SimCSE-style outer product (A, 1, D) x (1, B, D) -> (A, B): MXU path, no (A, B, D) tensor.
    split = _outer_split(x.shape, y.shape)
    if split is not None:
        x_rows, y_rows = split
        out = _cosine_outer(x.reshape(x_rows, d), y.reshape(y_rows, d), temp, eps, out_dtype,
                            vmem_limit, tile_budget)
        return out.reshape(lead)

    # TODO(synk): interleaved / feature-dim broadcast patterns fall back to materializing.
    xb = jnp.broadcast_to(x, full).reshape(-1, d)
    yb = jnp.broadcast_to(y, full).reshape(-1, d)
    out = _cosine_rows(xb, yb, temp, eps, out_dtype, vmem_limit, tile_budget)
    return out.reshape(lead)


def _reference(x, y, temp, eps=1e-8):
    full = jnp.broadcast_shapes(x.shape, y.shape)
    xb = jnp.broadcast_to(x, full).astype(jnp.float32)
    yb = jnp.broadcast_to(y, full).astype(jnp.float32)
    xn = jnp.maximum(jnp.linalg.norm(xb, axis=-1, keepdims=True), eps)
    yn = jnp.maximum(jnp.linalg.norm(yb, axis=-1, keepdims=True), eps)
    return jnp.sum((xb / xn) * (yb / yn), axis=-1) / temp


if __name__ == "__main__":
    key = jax.random.PRNGKey(0)
    k1, k2, k3 = jax.random.split(key, 3)

    batch, hidden = 8, 32
    temp = 0.05

    z1 = jax.random.normal(k1, (batch, hidden), dtype=jnp.float32)
    z2 = jax.random.normal(k2, (batch, hidden), dtype=jnp.float32)

    # SimCSE-style broadcast: (B, 1, H) vs (1, B, H) -> (B, B) similarity matrix (MXU path).
    x = z1[:, None, :]
    y = z2[None, :, :]
    out = jax.block_until_ready(similarity(x, y, temp))
    ref = _reference(x, y, temp)
    assert out.shape == (batch, batch), out.shape
    np.testing.assert_allclose(np.asarray(out), np.asarray(ref), rtol=1e-5, atol=1e-5)

    # Plain same-shape case (B, H) -> (B,) (row path).
    out2 = jax.block_until_ready(similarity(z1, z2, temp))
    ref2 = _reference(z1, z2, temp)
    np.testing.assert_allclose(np.asarray(out2), np.asarray(ref2), rtol=1e-5, atol=1e-5)

    # Single-vector broadcast (B, H) vs (H,) -> (B,) (row path, broadcast operand via BlockSpec).
    v = jax.random.normal(k3, (hidden,), dtype=jnp.float32)
    out3 = jax.block_until_ready(similarity(z1, v, temp))
    ref3 = _reference(z1, v, temp)
    np.testing.assert_allclose(np.asarray(out3), np.asarray(ref3), rtol=1e-5, atol=1e-5)

    print("KERNEL_OK")
</pallas_src>

<mosaic_0001>
module attributes {stable_mosaic.version = 11 : i64} {
  func.func @_inv_norm_kernel(%arg0: i32, %arg1: memref<8x32xf32, #tpu.memory_space<vmem>>, %arg2: memref<8x1xf32, #tpu.memory_space<vmem>>) attributes {dimension_semantics = [#tpu.dimension_semantics<parallel>], iteration_bounds = array<i64: 1>, scalar_prefetch = 0 : i64, scratch_operands = 0 : i64, tpu.core_type = #tpu.core_type<tc>, window_params = [{transform_indices = @transform_0, window_bounds = array<i64: 8, 32>}, {transform_indices = @transform_1, window_bounds = array<i64: 8, 1>}]} {
    %c0 = arith.constant 0 : index
    %c0_0 = arith.constant 0 : index
    %0 = vector.load %arg1[%c0, %c0_0] : memref<8x32xf32, #tpu.memory_space<vmem>>, vector<8x32xf32>
    %1 = arith.mulf %0, %0 : vector<8x32xf32>
    %cst = arith.constant dense<0.000000e+00> : vector<8xf32>
    %2 = vector.multi_reduction <add>, %1, %cst [1] : vector<8x32xf32> to vector<8xf32>
    %3 = vector.shape_cast %2 : vector<8xf32> to vector<8x1xf32>
    %4 = math.rsqrt %3 : vector<8x1xf32>
    %cst_1 = arith.constant 1.000000e+08 : f32
    %5 = vector.broadcast %cst_1 : f32 to vector<8x1xf32>
    %6 = arith.minimumf %4, %5 : vector<8x1xf32>
    %c0_2 = arith.constant 0 : index
    %c0_3 = arith.constant 0 : index
    %7 = vector.load %arg2[%c0_2, %c0_3] : memref<8x1xf32, #tpu.memory_space<vmem>>, vector<8x1xf32>
    tpu.vector_store %arg2[%c0_2, %c0_3], %6 {strides = array<i32>} : memref<8x1xf32, #tpu.memory_space<vmem>>, vector<8x1xf32>,
    return
  }
  func.func @transform_0(%arg0: i32) -> (i32, i32) {
    %c0_i32 = arith.constant 0 : i32
    %c0_i32_0 = arith.constant 0 : i32
    return %arg0, %c0_i32 : i32, i32
  }
  func.func @transform_1(%arg0: i32) -> (i32, i32) {
    %c0_i32 = arith.constant 0 : i32
    %c0_i32_0 = arith.constant 0 : i32
    return %arg0, %c0_i32 : i32, i32
  }
}

</mosaic_0001>

<bundles_post_ra>
// kernel: tpu_custom_call.1
= control target key start
LH: loop header
LB: loop body
LE: loop exit
PB: predicated region body
PF: predicated region fallthrough
CT: control target
= control target key end

     0   :  { %6 = vsyncpa [#allocation3], 0  ;;  %s62_s6 = smov [#allocation2]   ;;  %s88_s0 = inlined_call_operand.hbm [shape: f32[8,32], index: 0, kind: input, shape index: {}]   ;;  %s89_s1 = inlined_call_operand.vmem [shape: f32[8,1], index: 1, kind: output, shape index: {}]  }
   0x1   :  { %s13_s7 = sshll.u32 %s62_s6, 4  ;;  %s38_s10 = scalar_lea.hbm %s88_s0, 128  ;;  %s14_s7 = int_to_ptr.vmem [resolvable:$true] %s13_s7 }
   0x2   :  { %p39_p0 = scmp.ne.s32.totalorder %s88_s0, %s38_s10  ;;  %p42_p1 = scmp.lt.u32.totalorder %s38_s10, %s88_s0 }
   0x4   :  { %p44_p2 = pnand %p42_p1, %p39_p0 }
   0x6   :  { %47 = shalt.err (!%p44_p2)
}
   0x7   :  { %s48_s15 = scalar_lea.vmem %s14_s7, 128  ;;  %p53_p4 = scmp.lt.s32.totalorder %s14_s7, %s14_s7 }
   0x8   :  { %p49_p3 = scmp.ne.s32.totalorder %s14_s7, %s48_s15  ;;  %p54_p5 = scmp.lt.s32.totalorder %s48_s15, %s48_s15 }
   0xa   :  { %p55_p6 = por %p54_p5, %p53_p4 }
   0xc   :  { %p56_p7 = pnand %p55_p6, %p49_p3 }
   0xe   :  { %59 = shalt.err (!%p56_p7)
}
   0xf   :  { %16 = dma.hbm_to_vmem [thread:$0]  %s88_s0, 128, %s14_s7, [#allocation3]  }
  0x10   :  { %60 = dma.done.wait [#allocation3], 128  }
  0x11   :  { %61 = vsyncadd [#allocation3], 4294967168  ;;  %v20_v0 = vld [vmem:[#allocation2] sm:$0xff]  ;;  %vm22_vm0 = vcmask 261120   ;;  %vm28_vm1 = vcmask 7168  }
  0x12   :  { %v21_v1 = vmul.f32 %v20_v0, %v20_v0 }
  0x14   :  { %v23_v2 = vsel %vm22_vm0, %v21_v1, 0.0 }
  0x15   :  { %24 = vadd.xlane.f32.xlu0 %v23_v2 }
  0xa2   :  { %v25_v3 = vpop.xlane.xlu0 %24 }
  0xa3   :  { %36 = vrsqrt.f32 %v25_v3 }
  0xad   :  { %v37_v4 = vpop.eup %36 }
  0xae   :  { %v27_v5 = vmin.f32 %v37_v4, 1e+08 }
  0xb0   :  { %29 = vst.msk [vmem:[%s89_s1] sm:$0xff] %vm28_vm1, %v27_v5 }
  0xb1   :  { %34 = vsyncpa [#allocation3], 1 }

</bundles_post_ra>
